<compile_context>
chip_gen: v5e
topology: v5e:2x2
jax: 0.10.0
libtpu: 0.0.40
codegen_flags: <defaults>
</compile_context>

<pallas_src>
import functools

import jax
import jax.numpy as jnp
from jax import lax
from jax.experimental import pallas as pl
from jax.experimental.pallas import tpu as pltpu


def _round_up(n, m):
    return ((n + m - 1) // m) * m


def _cdiv(a, b):
    return -(-a // b)


def brain_kernel(x_ref, w1_ref, b1_ref, w2c_ref, b2_ref, o_ref, *, precision):
    # Feature-major tiles (batch on the 128-lane axis):
    #   x_ref  : (F, TB)  input tile            w1_ref : (H, F)  fc1 weight
    #   b1_ref : (H, 1)   fc1 bias (column)     w2c_ref: (H, O)  fc2 weight^T
    #   b2_ref : (O, 1)   fc2 bias (column)     o_ref  : (O, TB) lane-dense output
    n_out = o_ref.shape[0]

    # fc1 on the MXU: (H,F)@(F,TB) -> (H,TB).  K=6/M=8 underutilize the MXU,
    # but its cycles are free filler next to the VPU/HBM, per the perf review.
    h = jnp.dot(w1_ref[...], x_ref[...],
                preferred_element_type=jnp.float32, precision=precision)
    h = jnp.maximum(h + b1_ref[...], 0.0)          # dense (H, TB) VPU work

    # fc2: for O=1 use a dense broadcast-multiply + sublane (XLU) reduction,
    # keeping the whole tail lane-dense; general O falls back to a small dot.
    if n_out == 1:
        z = jnp.sum(w2c_ref[...] * h, axis=0, keepdims=True)      # (1, TB)
    else:
        z = lax.dot_general(w2c_ref[...], h, (((0,), (0,)), ((), ())),
                            preferred_element_type=jnp.float32,
                            precision=precision)                   # (O, TB)
    z = z + b2_ref[...]

    # Numerically stable sigmoid: exp on the EUP, exact reciprocal.
    ez = jnp.exp(-jnp.abs(z))
    o_ref[...] = jnp.where(z >= 0.0, 1.0, ez) * pl.reciprocal(1.0 + ez,
                                                              approx=False)


def brain_forward_pallas(x, w1, b1, w2, b2, *, tile_b=16384, min_grid=2,
                         x_feature_major=False, mxu_precision=None):
    """Pallas forward pass.

    PyTorch Linear layouts: w1 (H,F), b1 (H,), w2 (O,H), b2 (O,).
    x is (B, F) by default, or (F, B) when x_feature_major=True (skips the
    wrapper transpose / extra HBM pass over x).  Returns (B, O) float32.
    """
    if x_feature_major:
        f_dim, batch = x.shape
    else:
        batch, f_dim = x.shape
    h_dim = w1.shape[0]
    n_out = w2.shape[0]
    assert w1.shape == (h_dim, f_dim) and w2.shape == (n_out, h_dim)

    # ---- batch tiling ----------------------------------------------------
    # Pad the batch only to a multiple of 128 lanes, then split into `grid`
    # roughly-equal 128-aligned tiles (waste <= 128*grid columns instead of
    # round_up(batch, tile_b)).  Keep >=2 grid steps when the batch allows it
    # so the "parallel" batch axis can shard across v7x's two TensorCores.
    b128 = _round_up(max(batch, 1), 128)
    grid = _cdiv(b128, tile_b)
    grid = max(grid, min(min_grid, b128 // 128))
    tb = _round_up(_cdiv(b128, grid), 128)
    grid = _cdiv(b128, tb)
    b_pad = grid * tb

    # ---- one-time layout plumbing (feature-major, lane-dense) -------------
    x32 = x.astype(jnp.float32)
    if x_feature_major:
        x_t = jnp.pad(x32, ((0, 0), (0, b_pad - batch)))
    else:
        # TODO(synk): callers that already hold feature-major activations (or
        # can fuse the relayout into the producer) should pass
        # x_feature_major=True; this transpose is an extra HBM pass over x.
        x_t = jnp.pad(x32.T, ((0, 0), (0, b_pad - batch)))
    w1f = w1.astype(jnp.float32)
    b1c = b1.reshape(h_dim, 1).astype(jnp.float32)
    w2c = w2.astype(jnp.float32).T                 # (H, O): broadcast/sublane-sum ready
    b2c = b2.reshape(n_out, 1).astype(jnp.float32)

    params_bytes = 4 * (w1.size + b1.size + w2.size + b2.size)
    cost = pl.CostEstimate(
        flops=2 * b_pad * (f_dim * h_dim + h_dim * n_out)
              + 4 * b_pad * (h_dim + n_out),
        transcendentals=b_pad * n_out,
        bytes_accessed=4 * b_pad * (f_dim + n_out) + grid * params_bytes,
    )

    # Rough VMEM footprint: double-buffered x/out blocks (sublane-padded to 8)
    # plus dense (8, TB) temporaries  ~  <400 B per lane.  Only raise the
    # scoped limit when the tile actually needs it (cap under v7x's 64 MiB).
    vmem_need = 384 * tb
    vmem_limit = (min(vmem_need + (8 << 20), 64 << 20)
                  if vmem_need > (12 << 20) else None)

    kernel = functools.partial(brain_kernel, precision=mxu_precision)

    out_t = pl.pallas_call(
        kernel,
        out_shape=jax.ShapeDtypeStruct((n_out, b_pad), jnp.float32),
        grid=(grid,),
        in_specs=[
            pl.BlockSpec((f_dim, tb), lambda i: (0, i)),      # x^T streams over batch
            pl.BlockSpec((h_dim, f_dim), lambda i: (0, 0)),   # params stay VMEM-resident
            pl.BlockSpec((h_dim, 1), lambda i: (0, 0)),
            pl.BlockSpec((h_dim, n_out), lambda i: (0, 0)),
            pl.BlockSpec((n_out, 1), lambda i: (0, 0)),
        ],
        out_specs=pl.BlockSpec((n_out, tb), lambda i: (0, i)),  # lane-dense store
        compiler_params=pltpu.CompilerParams(
            dimension_semantics=("parallel",),
            vmem_limit_bytes=vmem_limit,
        ),
        cost_estimate=cost,
    )(x_t, w1f, b1c, w2c, b2c)

    return out_t[:, :batch].T


def reference_forward(x, w1, b1, w2, b2):
    h = jnp.maximum(
        jnp.dot(x, w1.T, precision=lax.Precision.HIGHEST) + b1, 0.0)
    z = jnp.dot(h, w2.T, precision=lax.Precision.HIGHEST) + b2
    return jax.nn.sigmoid(z)


def brain_forward(x, w1, b1, w2, b2, *, min_pallas_batch=512, tile_b=16384):
    """Dispatcher: tiny batches go to a fused XLA op (pallas_call fixed cost),
    larger batches to the bandwidth-bound Pallas kernel (threshold re-tuned
    down now that the tile amortizes the per-step cost)."""
    if x.shape[0] < min_pallas_batch:
        return reference_forward(x, w1, b1, w2, b2)
    return brain_forward_pallas(x, w1, b1, w2, b2, tile_b=tile_b)


def init_params(key, num_input=6, hidden=8, num_output=1):
    # PyTorch nn.Linear default init: U(-1/sqrt(fan_in), 1/sqrt(fan_in)),
    # weights kept in PyTorch (out_features, in_features) layout.
    k1, k2, k3, k4 = jax.random.split(key, 4)
    bound1 = 1.0 / jnp.sqrt(num_input)
    bound2 = 1.0 / jnp.sqrt(hidden)
    w1 = jax.random.uniform(k1, (hidden, num_input), jnp.float32, -bound1, bound1)
    b1 = jax.random.uniform(k2, (hidden,), jnp.float32, -bound1, bound1)
    w2 = jax.random.uniform(k3, (num_output, hidden), jnp.float32, -bound2, bound2)
    b2 = jax.random.uniform(k4, (num_output,), jnp.float32, -bound2, bound2)
    return w1, b1, w2, b2


if __name__ == "__main__":
    key = jax.random.PRNGKey(0)
    k_params, k_x1, k_x2 = jax.random.split(key, 3)

    num_input, hidden, num_output = 6, 8, 1
    w1, b1, w2, b2 = init_params(k_params, num_input, hidden, num_output)

    # 5e-3 tolerance: the MXU's f32 accumulation pass count is generation /
    # default-precision dependent (worst case ~1e-3 through the sigmoid);
    # layout/indexing bugs would show up as O(0.1-1) errors.
    TOL = 5e-3

    # (1) Small, non-multiple-of-128 batch: lane padding, single grid step.
    batch1 = 37
    x1 = jax.random.normal(k_x1, (batch1, num_input), jnp.float32)
    out1 = jax.block_until_ready(brain_forward_pallas(x1, w1, b1, w2, b2))
    ref1 = reference_forward(x1, w1, b1, w2, b2)
    assert out1.shape == (batch1, num_output), out1.shape
    assert jnp.allclose(out1, ref1, atol=TOL, rtol=0.0), float(
        jnp.max(jnp.abs(out1 - ref1)))

    # (2) Multi-step grid (tiny tile_b forces grid=2) + ragged batch tiling.
    batch2 = 300
    x2 = jax.random.normal(k_x2, (batch2, num_input), jnp.float32)
    out2 = jax.block_until_ready(
        brain_forward_pallas(x2, w1, b1, w2, b2, tile_b=256))
    ref2 = reference_forward(x2, w1, b1, w2, b2)
    assert out2.shape == (batch2, num_output), out2.shape
    assert jnp.allclose(out2, ref2, atol=TOL, rtol=0.0), float(
        jnp.max(jnp.abs(out2 - ref2)))

    # (3) Feature-major input path (skips the wrapper transpose) matches.
    out1_fm = jax.block_until_ready(
        brain_forward_pallas(x1.T, w1, b1, w2, b2, x_feature_major=True))
    assert jnp.array_equal(out1, out1_fm)

    print("KERNEL_OK")
</pallas_src>

<mosaic_0001>
module attributes {stable_mosaic.version = 11 : i64} {
  func.func @brain_kernel(%arg0: i32, %arg1: memref<6x128xf32, #tpu.memory_space<vmem>>, %arg2: memref<8x6xf32, #tpu.memory_space<vmem>>, %arg3: memref<8x1xf32, #tpu.memory_space<vmem>>, %arg4: memref<8x1xf32, #tpu.memory_space<vmem>>, %arg5: memref<1x1xf32, #tpu.memory_space<vmem>>, %arg6: memref<1x128xf32, #tpu.memory_space<vmem>>) attributes {dimension_semantics = [#tpu.dimension_semantics<parallel>], iteration_bounds = array<i64: 1>, scalar_prefetch = 0 : i64, scratch_operands = 0 : i64, tpu.core_type = #tpu.core_type<tc>, window_params = [{transform_indices = @transform_0, window_bounds = array<i64: 6, 128>}, {pipeline_mode = #tpu.pipeline_mode<synchronous>, transform_indices = @transform_1, window_bounds = array<i64: 8, 6>}, {pipeline_mode = #tpu.pipeline_mode<synchronous>, transform_indices = @transform_2, window_bounds = array<i64: 8, 1>}, {pipeline_mode = #tpu.pipeline_mode<synchronous>, transform_indices = @transform_3, window_bounds = array<i64: 8, 1>}, {pipeline_mode = #tpu.pipeline_mode<synchronous>, transform_indices = @transform_4, window_bounds = array<i64: 1, 1>}, {transform_indices = @transform_5, window_bounds = array<i64: 1, 128>}]} {
    %c0 = arith.constant 0 : index
    %c0_0 = arith.constant 0 : index
    %0 = vector.load %arg2[%c0, %c0_0] : memref<8x6xf32, #tpu.memory_space<vmem>>, vector<8x6xf32>
    %c0_1 = arith.constant 0 : index
    %c0_2 = arith.constant 0 : index
    %1 = vector.load %arg1[%c0_1, %c0_2] : memref<6x128xf32, #tpu.memory_space<vmem>>, vector<6x128xf32>
    %cst = arith.constant dense<0.000000e+00> : vector<8x128xf32>
    %2 = tpu.matmul %0, %1, %cst {dimension_numbers = #tpu.dot_dimension_numbers<[1], [0], [0], [1], [0, 0, 1, 1], [], []>} : vector<8x6xf32>, vector<6x128xf32>, vector<8x128xf32> -> vector<8x128xf32>
    %c0_3 = arith.constant 0 : index
    %c0_4 = arith.constant 0 : index
    %3 = vector.load %arg3[%c0_3, %c0_4] : memref<8x1xf32, #tpu.memory_space<vmem>>, vector<8x1xf32>
    %4 = vector.broadcast %3 : vector<8x1xf32> to vector<8x128xf32>
    %5 = arith.addf %2, %4 : vector<8x128xf32>
    %cst_5 = arith.constant 0.000000e+00 : f32
    %6 = vector.broadcast %cst_5 : f32 to vector<8x128xf32>
    %7 = arith.maximumf %5, %6 : vector<8x128xf32>
    %c0_6 = arith.constant 0 : index
    %c0_7 = arith.constant 0 : index
    %8 = vector.load %arg4[%c0_6, %c0_7] : memref<8x1xf32, #tpu.memory_space<vmem>>, vector<8x1xf32>
    %9 = vector.broadcast %8 : vector<8x1xf32> to vector<8x128xf32>
    %10 = arith.mulf %9, %7 : vector<8x128xf32>
    %cst_8 = arith.constant dense<0.000000e+00> : vector<128xf32>
    %11 = vector.multi_reduction <add>, %10, %cst_8 [0] : vector<8x128xf32> to vector<128xf32>
    %12 = vector.shape_cast %11 : vector<128xf32> to vector<1x128xf32>
    %c0_9 = arith.constant 0 : index
    %c0_10 = arith.constant 0 : index
    %13 = vector.load %arg5[%c0_9, %c0_10] : memref<1x1xf32, #tpu.memory_space<vmem>>, vector<1x1xf32>
    %14 = vector.broadcast %13 : vector<1x1xf32> to vector<1x128xf32>
    %15 = arith.addf %12, %14 : vector<1x128xf32>
    %16 = math.absf %15 : vector<1x128xf32>
    %cst_11 = arith.constant 0.000000e+00 : f32
    %17 = vector.broadcast %cst_11 : f32 to vector<1x128xf32>
    %18 = arith.subf %17, %16 : vector<1x128xf32>
    %19 = math.exp %18 : vector<1x128xf32>
    %cst_12 = arith.constant 0.000000e+00 : f32
    %20 = vector.broadcast %cst_12 : f32 to vector<1x128xf32>
    %21 = arith.cmpf oge, %15, %20 : vector<1x128xf32>
    %cst_13 = arith.constant 1.000000e+00 : f32
    %22 = vector.broadcast %cst_13 : f32 to vector<1x128xf32>
    %23 = arith.select %21, %22, %19 : vector<1x128xi1>, vector<1x128xf32>
    %cst_14 = arith.constant 1.000000e+00 : f32
    %24 = vector.broadcast %cst_14 : f32 to vector<1x128xf32>
    %25 = arith.addf %24, %19 : vector<1x128xf32>
    %26 = tpu.reciprocal %25 : vector<1x128xf32> -> vector<1x128xf32>
    %27 = arith.mulf %23, %26 : vector<1x128xf32>
    %c0_15 = arith.constant 0 : index
    %c0_16 = arith.constant 0 : index
    %28 = vector.load %arg6[%c0_15, %c0_16] : memref<1x128xf32, #tpu.memory_space<vmem>>, vector<1x128xf32>
    tpu.vector_store %arg6[%c0_15, %c0_16], %27 {strides = array<i32>} : memref<1x128xf32, #tpu.memory_space<vmem>>, vector<1x128xf32>,
    return
  }
  func.func @transform_0(%arg0: i32) -> (i32, i32) {
    %c0_i32 = arith.constant 0 : i32
    %c0_i32_0 = arith.constant 0 : i32
    return %c0_i32, %arg0 : i32, i32
  }
  func.func @transform_1(%arg0: i32) -> (i32, i32) {
    %c0_i32 = arith.constant 0 : i32
    %c0_i32_0 = arith.constant 0 : i32
    %c0_i32_1 = arith.constant 0 : i32
    return %c0_i32, %c0_i32_0 : i32, i32
  }
  func.func @transform_2(%arg0: i32) -> (i32, i32) {
    %c0_i32 = arith.constant 0 : i32
    %c0_i32_0 = arith.constant 0 : i32
    %c0_i32_1 = arith.constant 0 : i32
    return %c0_i32, %c0_i32_0 : i32, i32
  }
  func.func @transform_3(%arg0: i32) -> (i32, i32) {
    %c0_i32 = arith.constant 0 : i32
    %c0_i32_0 = arith.constant 0 : i32
    %c0_i32_1 = arith.constant 0 : i32
    return %c0_i32, %c0_i32_0 : i32, i32
  }
  func.func @transform_4(%arg0: i32) -> (i32, i32) {
    %c0_i32 = arith.constant 0 : i32
    %c0_i32_0 = arith.constant 0 : i32
    %c0_i32_1 = arith.constant 0 : i32
    return %c0_i32, %c0_i32_0 : i32, i32
  }
  func.func @transform_5(%arg0: i32) -> (i32, i32) {
    %c0_i32 = arith.constant 0 : i32
    %c0_i32_0 = arith.constant 0 : i32
    return %c0_i32, %arg0 : i32, i32
  }
}

</mosaic_0001>

<bundles_post_ra>
// kernel: tpu_custom_call.1
= control target key start
LH: loop header
LB: loop body
LE: loop exit
PB: predicated region body
PF: predicated region fallthrough
CT: control target
= control target key end

     0   :  { %s206_s0 = inlined_call_operand.vmem [shape: f32[6,128], index: 0, kind: input, shape index: {}]   ;;  %s207_s1 = inlined_call_operand.vmem [shape: f32[8,6], index: 1, kind: input, shape index: {}]   ;;  %s208_s2 = inlined_call_operand.vmem [shape: f32[8,1], index: 2, kind: input, shape index: {}]   ;;  %s209_s3 = inlined_call_operand.vmem [shape: f32[8,1], index: 3, kind: input, shape index: {}]   ;;  %s210_s4 = inlined_call_operand.<no memory space> [shape: f32[1,1], index: 4, kind: input, shape index: {}]   ;;  %s211_s5 = inlined_call_operand.hbm [shape: f32[1,128], index: 5, kind: output, shape index: {}]  }
   0x1   :  { %v10_v0 = vstv %s210_s4 }
   0x2   :  { %11 = vst [vmem:[#allocation2] sm:$0x1] %v10_v0 }
   0x3   :  { %v24_v1 = vld [vmem:[%s206_s0] sm:$0x3f]  ;;  %vm35_vm0 = vcmask 1045504   ;;  %v156_v4 = vmov 0   ;;  %vm31_vm1 = vcmask 48128  }
   0x4   :  { %v25_v2 = vld [vmem:[%s208_s2] sm:$0xff]  ;;  %124 = vset.pattern.permute.xlu0 %v156_v4  ;;  %120 = vmatpush.msk.msra.mxu0 %vm35_vm0, %v24_v1 }
   0x5   :  { %v23_v3 = vld [vmem:[%s207_s1] sm:$0xff] }
   0x9   :  { %v73_v5 = vld [vmem:[#allocation2] sm:$0x1] }
   0xa   :  { %12 = vsyncpa [#allocation4], 0  ;;  %28 = vperm.xlu0 %124, %v25_v2   ;;  %121 = vmatmul.msk.f32.vlgmr.msra.gmra.mxu0 %vm31_vm1, %v23_v3  ;;  %v60_v6 = vld [vmem:[%s209_s3] sm:$0xff]  ;;  %s157_s1 = smov [#allocation3]   ;;  %s111_s27 = sshll.u32 %s211_s5, 4  ;;  %s112_s27 = int_to_ptr.hbm [resolvable:$true] %s111_s27 }
   0xb   :  { %125 = vset.pattern.permute.xlu1 %v156_v4  ;;  %s109_s2 = sshll.u32 %s157_s1, 4  ;;  %s110_s2 = int_to_ptr.vmem [resolvable:$true] %s109_s2 }
   0xc   :  { %76 = vperm.xlu1 %125, %v73_v5  }
  0x12   :  { %63 = vperm.xlu0 %124, %v60_v6  }
  0x7c   :  { %v29_v7 = vpop.permute.xlu0 %28 }
  0x7e   :  { %v77_v16 = vpop.permute.xlu1 %76 }
  0x7f   :  { %v79_v19 = vperm.slane %v77_v16, 0 }
  0x84   :  { %v64_v11 = vpop.permute.xlu0 %63 }
  0x87   :  { %v56_v8 = vpop.f32.mrf.mxu0 }
  0x88   :  { %v57_v9 = vadd.f32 %v56_v8, %v29_v7 }
  0x8a   :  { %v59_v10 = vmax.f32 %v57_v9, 0.0 }
  0x8c   :  { %v66_v12 = vmul.f32 %v64_v11, %v59_v10 }
  0x8e   :  { %v67_v13 = vrot.slane %v66_v12, 4 }
  0x90   :  { %v68_v14 = vadd.f32 %v67_v13, %v66_v12 }
  0x92   :  { %v69_v15 = vrot.slane %v68_v14, 2 }
  0x94   :  { %v70_v17 = vadd.f32 %v69_v15, %v68_v14 }
  0x96   :  { %v71_v18 = vrot.slane %v70_v17, 1 }
  0x98   :  { %v72_v20 = vadd.f32 %v71_v18, %v70_v17 }
  0x9a   :  { %v80_v21 = vadd.f32 %v79_v19, %v72_v20 }
  0x9c   :  { %v81_v22 = vand.u32 2147483647, %v80_v21  ;;  %vm85_vm5 = vcmp.ge.f32.partialorder %v80_v21, 0.0 }
  0x9e   :  { %v82_v23 = vsub.f32 0.0, %v81_v22 }
  0xa0   :  { %v83_v24 = vmul.f32 1.442695, %v82_v23 }
  0xa2   :  { %126 = vpow2.f32 %v83_v24 }
  0xa8   :  { %v127_v25 = vpop.eup %126 }
  0xa9   :  { %v87_v26 = vadd.f32 1.0, %v127_v25  ;;  %v86_v36 = vsel %vm85_vm5, 1.0, %v127_v25 }
  0xab   :  { %128 = vrcp.f32 %v87_v26  ;;  %v99_v30 = vand.u32 2147483648, %v87_v26  ;;  %v97_v32 = vand.u32 2147483647, %v87_v26  ;;  %vm93_vm3 = vweird.f32 %v87_v26 }
  0xad   :  { %v100_v34 = vor.u32 1.1754944e-38, %v99_v30  ;;  %vm98_vm6 = vcmp.eq.f32.partialorder %v97_v32, 8.507059e+37 }
  0xb1   :  { %v129_v27 = vpop.eup %128 }
  0xb2   :  { %v89_v28 = vmul.f32 %v129_v27, %v87_v26  ;;  %vm94_vm2 = vweird.f32 %v129_v27 }
  0xb3   :  { %vm95_vm4 = vmor %vm93_vm3, %vm94_vm2 }
  0xb4   :  { %v90_v29 = vsub.f32 1.0, %v89_v28 }
  0xb6   :  { %v91_v31 = vmul.f32 %v129_v27, %v90_v29 }
  0xb8   :  { %v92_v33 = vadd.f32 %v129_v27, %v91_v31 }
  0xba   :  { %v96_v35 = vsel %vm95_vm4, %v129_v27, %v92_v33 }
  0xbb   :  { %v101_v37 = vsel %vm98_vm6, %v100_v34, %v96_v35 }
  0xbc   :  { %v102_v38 = vmul.f32 %v101_v37, %v86_v36 }
  0xbe   :  { %103 = vst [vmem:[#allocation3] sm:$0x1] %v102_v38 }
  0xbf   :  { %114 = dma.vmem_to_hbm [thread:$0]  %s110_s2, 16, %s112_s27, [#allocation4]  }
  0xc0   :  { %154 = dma.done.wait [#allocation4], 16  }
  0xc1   :  { %155 = vsyncadd [#allocation4], 4294967280 }
  0xc2   :  { %119 = vsyncpa [#allocation4], 1 }

</bundles_post_ra>
